<compile_context>
chip_gen: v7x
topology: tpu7x:2x2x1
jax: 0.10.0
libtpu: 0.0.40
codegen_flags: <defaults>
</compile_context>

<pallas_src>
import math
import functools

import jax
import jax.numpy as jnp
from jax.experimental import pallas as pl
from jax.experimental.pallas import tpu as pltpu


def _temporal_mha_kernel(xt_ref, w_ref, b_ref, xout_ref, attn_ref, *, heads_num):
    """One batch block.

    xt_ref  : (bb, T, N*C)  bf16  time-major flat view of x
    w_ref   : (N*C, 2N)     bf16  fused channel_linear + q/k in-projection (q pre-scaled)
    b_ref   : (1, 2N)       f32   fused bias
    xout_ref: (bb, T, N*C)  f32
    attn_ref: (bb, T, T)    f32   head-averaged attention weights
    """
    xt = xt_ref[...]                                   # (bb, T, NC) bf16
    two_n = w_ref.shape[1]
    n_vert = two_n // 2
    d = n_vert // heads_num
    bb, t_len, _ = xt_ref.shape

    # Fused channel_linear + Q/K in-projection (+ q scaling): one canonical MXU matmul,
    # bf16 operands, f32 accumulation.  (bb, T) collapse into the M dimension.
    qk = jax.lax.dot_general(
        xt, w_ref[...], (((2,), (0,)), ((), ())),
        preferred_element_type=jnp.float32)            # (bb, T, 2N) f32
    qk = qk + b_ref[...].reshape(1, 1, two_n)
    qkb = qk.astype(jnp.bfloat16)                      # bf16 operands for score matmuls

    # Per-head scores + softmax, accumulating the head average directly (no jnp.stack,
    # no (H, bb, T, T) intermediate).  1/H is folded into the softmax denominator.
    # TODO(synk): a single (batch, head)-batched dot_general would collapse this loop,
    # but Mosaic's dot_general lowering only supports one batch dimension.
    attn = jnp.zeros((bb, t_len, t_len), jnp.float32)
    for h in range(heads_num):                         # tiny static loop (H is small)
        qh = qkb[:, :, h * d:(h + 1) * d]                           # (bb, T, d)
        kh = qkb[:, :, n_vert + h * d:n_vert + (h + 1) * d]         # (bb, T, d)
        s = jax.lax.dot_general(                                     # (bb, T, T) f32
            qh, kh, (((2,), (2,)), ((0,), (0,))),
            preferred_element_type=jnp.float32)
        s = s - jnp.max(s, axis=-1, keepdims=True)
        p = jnp.exp(s)
        denom = jnp.sum(p, axis=-1, keepdims=True) * float(heads_num)
        # exact reciprocal (approx=False): attn is a user-visible output.
        attn = attn + p * pl.reciprocal(denom, approx=False)
    attn_ref[...] = attn

    # x_out_t[b, t, m] = sum_s attn[b, t, s] * x_t[b, s, m]
    # canonical batched matmul ('bts,bsm->btm'); output lane-dense in N*C.
    xout_ref[...] = jax.lax.dot_general(
        attn.astype(jnp.bfloat16), xt, (((2,), (1,)), ((0,), (0,))),
        preferred_element_type=jnp.float32)


def _tpu_vmem_limit_and_cores():
    """(vmem_limit_bytes, tensorcores_per_chip), generation-aware with safe fallbacks."""
    phys = None
    try:
        phys = getattr(pltpu.get_tpu_info(), "vmem_capacity_bytes", None)
    except Exception:
        phys = None
    kind = ""
    try:
        kind = jax.devices()[0].device_kind.lower()
    except Exception:
        pass
    is_v7 = "7" in kind
    if not phys or phys <= 0:
        phys = (64 if is_v7 else 128) * 1024 * 1024
    # ~25% headroom for Mosaic internal scratch -> ~48 MiB on v7x, ~96 MiB on v5e/v6e.
    return int(phys) * 3 // 4, (2 if is_v7 else 1)


def _pick_batch_block(B, per_batch_bytes, resident_bytes, vmem_budget_bytes, num_cores):
    """Largest batch block that fits the VMEM budget; keeps >=2 steps/core on multi-TC chips."""
    avail = max(per_batch_bytes, vmem_budget_bytes - resident_bytes)
    bb = max(1, min(B, avail // per_batch_bytes))
    if num_cores > 1 and B > 1:
        target_steps = min(B, 2 * num_cores)           # >= 2 grid steps per TensorCore
        bb = min(bb, max(1, -(-B // target_steps)))
    return int(bb)


def temporal_mha_pallas(x, params, heads_num: int):
    """x: (B, N, C, T) float32. Returns (x_out (B,N,C,T) f32, attn (B,T,T) f32)."""
    B, N, C, T = x.shape
    assert N % heads_num == 0
    d = N // heads_num
    NC = N * C
    w_lin, b_lin, wq, bq, wk, bk = (params[k] for k in
                                    ("w_lin", "b_lin", "wq", "bq", "wk", "bk"))

    # ---- wrapper-side weight fusion (tiny arrays, free at trace time) ----
    scale = 1.0 / math.sqrt(d)
    wqk_t = jnp.concatenate([wq.T * scale, wk.T], axis=1)           # (N, 2N), q pre-scaled
    bqk = jnp.concatenate([bq * scale, bk])                         # (2N,)
    # fold channel_linear (C -> 1) into the in-projection:
    #   W_big[n*C + c, j] = w_lin[c] * wqk_t[n, j]
    w_big = (w_lin.reshape(1, C, 1) * wqk_t.reshape(N, 1, 2 * N)).reshape(NC, 2 * N)
    w_big = w_big.astype(jnp.bfloat16)                              # bf16 MXU operand
    b_big = (b_lin[0] * jnp.sum(wqk_t, axis=0) + bqk).reshape(1, 2 * N).astype(jnp.float32)

    # Time-major flat view (B, T, N*C): all in-kernel dots are then natively oriented and
    # x_out is lane-dense in N*C.  bf16 halves the streamed HBM traffic for x.
    xt = jnp.transpose(x, (0, 3, 1, 2)).reshape(B, T, NC).astype(jnp.bfloat16)

    vmem_limit, num_cores = _tpu_vmem_limit_and_cores()
    # per-batch-element VMEM footprint (bf16/f32-aware)
    per_b = (2 * (2 * T * NC)             # bf16 x block, double-buffered
             + 2 * (4 * T * NC)           # f32 x_out block, double-buffered
             + 2 * (4 * T * T)            # f32 attn block, double-buffered
             + 6 * T * (2 * N)            # qk f32 + qkb bf16
             + 4 * (4 * T * T))           # s / p / attn-accumulator temps
    resident = 2 * (2 * NC * 2 * N) + 2 * (4 * 2 * N)  # weight+bias (default double buffer)
    bb = _pick_batch_block(B, per_b, resident, int(vmem_limit * 0.8), num_cores)

    steps = -(-B // bb)                   # ceil
    B_pad = steps * bb
    if B_pad != B:                        # pad awkward batch sizes instead of bb=1 cliff
        xt = jnp.pad(xt, ((0, B_pad - B), (0, 0), (0, 0)))

    kernel = functools.partial(_temporal_mha_kernel, heads_num=heads_num)

    xout_t, attn = pl.pallas_call(
        kernel,
        out_shape=(
            jax.ShapeDtypeStruct((B_pad, T, NC), jnp.float32),
            jax.ShapeDtypeStruct((B_pad, T, T), jnp.float32),
        ),
        grid_spec=pltpu.PrefetchScalarGridSpec(
            num_scalar_prefetch=0,
            grid=(steps,),
            in_specs=[
                pl.BlockSpec((bb, T, NC), lambda i: (i, 0, 0)),     # x (time-major, bf16)
                pl.BlockSpec((NC, 2 * N), lambda i: (0, 0)),        # fused weight (resident)
                pl.BlockSpec((1, 2 * N), lambda i: (0, 0)),         # fused bias   (resident)
            ],
            out_specs=[
                pl.BlockSpec((bb, T, NC), lambda i: (i, 0, 0)),     # x_out (time-major)
                pl.BlockSpec((bb, T, T), lambda i: (i, 0, 0)),      # attn
            ]),
        compiler_params=pltpu.CompilerParams(
            dimension_semantics=("parallel",),
            vmem_limit_bytes=int(vmem_limit)),
    )(xt, w_big, b_big)

    if B_pad != B:
        xout_t = xout_t[:B]
        attn = attn[:B]
    x_out = jnp.transpose(xout_t.reshape(B, T, N, C), (0, 2, 3, 1))
    return x_out, attn


def temporal_mha_ref(x, params, heads_num: int):
    """Pure-JAX reference mirroring the PyTorch forward (f32 everywhere)."""
    B, N, C, T = x.shape
    H, d = heads_num, N // heads_num
    w_lin, b_lin, wq, bq, wk, bk = (params[k] for k in
                                    ("w_lin", "b_lin", "wq", "bq", "wk", "bk"))
    xin = jnp.einsum("bnct,c->btn", x, w_lin[:, 0]) + b_lin[0]     # (B, T, N)
    q = jnp.einsum("btn,mn->btm", xin, wq) + bq                    # xin @ Wq^T + bq
    k = jnp.einsum("btn,mn->btm", xin, wk) + bk
    qh = q.reshape(B, T, H, d).transpose(0, 2, 1, 3) / math.sqrt(d)
    kh = k.reshape(B, T, H, d).transpose(0, 2, 1, 3)
    s = jnp.einsum("bhqd,bhkd->bhqk", qh, kh)
    attn = jax.nn.softmax(s, axis=-1).mean(axis=1)                 # (B, T, T) head-avg
    x_out = jnp.einsum("bms,bts->bmt", x.reshape(B, N * C, T), attn)
    return x_out.reshape(B, N, C, T), attn


def init_params(key, in_channels, vertices_num):
    ks = jax.random.split(key, 6)
    C, N = in_channels, vertices_num
    return {
        "w_lin": 0.1 * jax.random.normal(ks[0], (C, 1), jnp.float32),
        "b_lin": 0.1 * jax.random.normal(ks[1], (1,), jnp.float32),
        "wq": 0.1 * jax.random.normal(ks[2], (N, N), jnp.float32),
        "bq": 0.1 * jax.random.normal(ks[3], (N,), jnp.float32),
        "wk": 0.1 * jax.random.normal(ks[4], (N, N), jnp.float32),
        "bk": 0.1 * jax.random.normal(ks[5], (N,), jnp.float32),
    }


if __name__ == "__main__":
    B, N, C, T = 2, 8, 4, 16      # batch, vertices, channels, time steps
    HEADS = 2                     # N % HEADS == 0

    key = jax.random.PRNGKey(0)
    kx, kp = jax.random.split(key)
    x = jax.random.normal(kx, (B, N, C, T), jnp.float32)
    params = init_params(kp, C, N)

    x_out, attn = temporal_mha_pallas(x, params, HEADS)
    jax.block_until_ready((x_out, attn))

    x_out_ref, attn_ref = temporal_mha_ref(x, params, HEADS)
    assert x_out.shape == (B, N, C, T) and attn.shape == (B, T, T)
    # tolerances account for bf16 MXU operands (f32 accumulation / softmax / outputs)
    assert jnp.allclose(attn, attn_ref, atol=1e-2, rtol=1e-2)
    assert jnp.allclose(x_out, x_out_ref, atol=5e-2, rtol=5e-2)

    print("KERNEL_OK")
</pallas_src>

<mosaic_0001>
module attributes {stable_mosaic.version = 11 : i64} {
  func.func @_temporal_mha_kernel(%arg0: i32, %arg1: memref<2x16x32xbf16, #tpu.memory_space<vmem>>, %arg2: memref<32x16xbf16, #tpu.memory_space<vmem>>, %arg3: memref<1x16xf32, #tpu.memory_space<vmem>>, %arg4: memref<2x16x32xf32, #tpu.memory_space<vmem>>, %arg5: memref<2x16x16xf32, #tpu.memory_space<vmem>>) attributes {dimension_semantics = [#tpu.dimension_semantics<parallel>], iteration_bounds = array<i64: 1>, scalar_prefetch = 0 : i64, scratch_operands = 0 : i64, tpu.core_type = #tpu.core_type<tc>, window_params = [{transform_indices = @transform_0, window_bounds = array<i64: 2, 16, 32>}, {pipeline_mode = #tpu.pipeline_mode<synchronous>, transform_indices = @transform_1, window_bounds = array<i64: 32, 16>}, {pipeline_mode = #tpu.pipeline_mode<synchronous>, transform_indices = @transform_2, window_bounds = array<i64: 1, 16>}, {transform_indices = @transform_3, window_bounds = array<i64: 2, 16, 32>}, {transform_indices = @transform_4, window_bounds = array<i64: 2, 16, 16>}]} {
    %c0 = arith.constant 0 : index
    %c0_0 = arith.constant 0 : index
    %c0_1 = arith.constant 0 : index
    %0 = vector.load %arg1[%c0, %c0_0, %c0_1] : memref<2x16x32xbf16, #tpu.memory_space<vmem>>, vector<2x16x32xbf16>
    %c0_2 = arith.constant 0 : index
    %c0_3 = arith.constant 0 : index
    %1 = vector.load %arg2[%c0_2, %c0_3] : memref<32x16xbf16, #tpu.memory_space<vmem>>, vector<32x16xbf16>
    %cst = arith.constant dense<0.000000e+00> : vector<2x16x16xf32>
    %2 = tpu.matmul %0, %1, %cst {dimension_numbers = #tpu.dot_dimension_numbers<[2], [0], [0, 1], [1], [0, 0, 0, 1, 1, 1], [], []>} : vector<2x16x32xbf16>, vector<32x16xbf16>, vector<2x16x16xf32> -> vector<2x16x16xf32>
    %c0_4 = arith.constant 0 : index
    %c0_5 = arith.constant 0 : index
    %3 = vector.load %arg3[%c0_4, %c0_5] : memref<1x16xf32, #tpu.memory_space<vmem>>, vector<1x16xf32>
    %4 = vector.shape_cast %3 : vector<1x16xf32> to vector<1x1x16xf32>
    %5 = vector.broadcast %4 : vector<1x1x16xf32> to vector<2x16x16xf32>
    %6 = arith.addf %2, %5 : vector<2x16x16xf32>
    %7 = arith.truncf %6 : vector<2x16x16xf32> to vector<2x16x16xbf16>
    %cst_6 = arith.constant 0.000000e+00 : f32
    %8 = vector.broadcast %cst_6 : f32 to vector<2x16x16xf32>
    %9 = vector.extract_strided_slice %7 {offsets = [0, 0, 0], sizes = [2, 16, 4], strides = [1, 1, 1]} : vector<2x16x16xbf16> to vector<2x16x4xbf16>
    %10 = vector.extract_strided_slice %7 {offsets = [0, 0, 8], sizes = [2, 16, 4], strides = [1, 1, 1]} : vector<2x16x16xbf16> to vector<2x16x4xbf16>
    %cst_7 = arith.constant dense<0.000000e+00> : vector<2x16x16xf32>
    %11 = tpu.matmul %9, %10, %cst_7 {dimension_numbers = #tpu.dot_dimension_numbers<[2], [2], [1], [1], [0, 0, 0, 1, 1, 1], [0], [0]>} : vector<2x16x4xbf16>, vector<2x16x4xbf16>, vector<2x16x16xf32> -> vector<2x16x16xf32>
    %cst_8 = arith.constant dense<0xFF800000> : vector<2x16xf32>
    %12 = vector.multi_reduction <maximumf>, %11, %cst_8 [2] : vector<2x16x16xf32> to vector<2x16xf32>
    %13 = vector.shape_cast %12 : vector<2x16xf32> to vector<2x16x1xf32>
    %14 = vector.broadcast %13 : vector<2x16x1xf32> to vector<2x16x16xf32>
    %15 = arith.subf %11, %14 : vector<2x16x16xf32>
    %16 = math.exp %15 : vector<2x16x16xf32>
    %cst_9 = arith.constant dense<0.000000e+00> : vector<2x16xf32>
    %17 = vector.multi_reduction <add>, %16, %cst_9 [2] : vector<2x16x16xf32> to vector<2x16xf32>
    %18 = vector.shape_cast %17 : vector<2x16xf32> to vector<2x16x1xf32>
    %cst_10 = arith.constant 2.000000e+00 : f32
    %19 = vector.broadcast %cst_10 : f32 to vector<2x16x1xf32>
    %20 = arith.mulf %18, %19 : vector<2x16x1xf32>
    %21 = tpu.reciprocal %20 : vector<2x16x1xf32> -> vector<2x16x1xf32>
    %22 = vector.broadcast %21 : vector<2x16x1xf32> to vector<2x16x16xf32>
    %23 = arith.mulf %16, %22 : vector<2x16x16xf32>
    %24 = arith.addf %8, %23 : vector<2x16x16xf32>
    %25 = vector.extract_strided_slice %7 {offsets = [0, 0, 4], sizes = [2, 16, 4], strides = [1, 1, 1]} : vector<2x16x16xbf16> to vector<2x16x4xbf16>
    %26 = vector.extract_strided_slice %7 {offsets = [0, 0, 12], sizes = [2, 16, 4], strides = [1, 1, 1]} : vector<2x16x16xbf16> to vector<2x16x4xbf16>
    %cst_11 = arith.constant dense<0.000000e+00> : vector<2x16x16xf32>
    %27 = tpu.matmul %25, %26, %cst_11 {dimension_numbers = #tpu.dot_dimension_numbers<[2], [2], [1], [1], [0, 0, 0, 1, 1, 1], [0], [0]>} : vector<2x16x4xbf16>, vector<2x16x4xbf16>, vector<2x16x16xf32> -> vector<2x16x16xf32>
    %cst_12 = arith.constant dense<0xFF800000> : vector<2x16xf32>
    %28 = vector.multi_reduction <maximumf>, %27, %cst_12 [2] : vector<2x16x16xf32> to vector<2x16xf32>
    %29 = vector.shape_cast %28 : vector<2x16xf32> to vector<2x16x1xf32>
    %30 = vector.broadcast %29 : vector<2x16x1xf32> to vector<2x16x16xf32>
    %31 = arith.subf %27, %30 : vector<2x16x16xf32>
    %32 = math.exp %31 : vector<2x16x16xf32>
    %cst_13 = arith.constant dense<0.000000e+00> : vector<2x16xf32>
    %33 = vector.multi_reduction <add>, %32, %cst_13 [2] : vector<2x16x16xf32> to vector<2x16xf32>
    %34 = vector.shape_cast %33 : vector<2x16xf32> to vector<2x16x1xf32>
    %cst_14 = arith.constant 2.000000e+00 : f32
    %35 = vector.broadcast %cst_14 : f32 to vector<2x16x1xf32>
    %36 = arith.mulf %34, %35 : vector<2x16x1xf32>
    %37 = tpu.reciprocal %36 : vector<2x16x1xf32> -> vector<2x16x1xf32>
    %38 = vector.broadcast %37 : vector<2x16x1xf32> to vector<2x16x16xf32>
    %39 = arith.mulf %32, %38 : vector<2x16x16xf32>
    %40 = arith.addf %24, %39 : vector<2x16x16xf32>
    %c0_15 = arith.constant 0 : index
    %c0_16 = arith.constant 0 : index
    %c0_17 = arith.constant 0 : index
    %41 = vector.load %arg5[%c0_15, %c0_16, %c0_17] : memref<2x16x16xf32, #tpu.memory_space<vmem>>, vector<2x16x16xf32>
    tpu.vector_store %arg5[%c0_15, %c0_16, %c0_17], %40 {strides = array<i32>} : memref<2x16x16xf32, #tpu.memory_space<vmem>>, vector<2x16x16xf32>,
    %42 = arith.truncf %40 : vector<2x16x16xf32> to vector<2x16x16xbf16>
    %cst_18 = arith.constant dense<0.000000e+00> : vector<2x16x32xf32>
    %43 = tpu.matmul %42, %0, %cst_18 {dimension_numbers = #tpu.dot_dimension_numbers<[2], [1], [1], [2], [0, 0, 0, 1, 1, 2], [0], [0]>} : vector<2x16x16xbf16>, vector<2x16x32xbf16>, vector<2x16x32xf32> -> vector<2x16x32xf32>
    %c0_19 = arith.constant 0 : index
    %c0_20 = arith.constant 0 : index
    %c0_21 = arith.constant 0 : index
    %44 = vector.load %arg4[%c0_19, %c0_20, %c0_21] : memref<2x16x32xf32, #tpu.memory_space<vmem>>, vector<2x16x32xf32>
    tpu.vector_store %arg4[%c0_19, %c0_20, %c0_21], %43 {strides = array<i32>} : memref<2x16x32xf32, #tpu.memory_space<vmem>>, vector<2x16x32xf32>,
    return
  }
  func.func @transform_0(%arg0: i32) -> (i32, i32, i32) {
    %c0_i32 = arith.constant 0 : i32
    %c0_i32_0 = arith.constant 0 : i32
    %c0_i32_1 = arith.constant 0 : i32
    return %arg0, %c0_i32, %c0_i32_0 : i32, i32, i32
  }
  func.func @transform_1(%arg0: i32) -> (i32, i32) {
    %c0_i32 = arith.constant 0 : i32
    %c0_i32_0 = arith.constant 0 : i32
    %c0_i32_1 = arith.constant 0 : i32
    return %c0_i32, %c0_i32_0 : i32, i32
  }
  func.func @transform_2(%arg0: i32) -> (i32, i32) {
    %c0_i32 = arith.constant 0 : i32
    %c0_i32_0 = arith.constant 0 : i32
    %c0_i32_1 = arith.constant 0 : i32
    return %c0_i32, %c0_i32_0 : i32, i32
  }
  func.func @transform_3(%arg0: i32) -> (i32, i32, i32) {
    %c0_i32 = arith.constant 0 : i32
    %c0_i32_0 = arith.constant 0 : i32
    %c0_i32_1 = arith.constant 0 : i32
    return %arg0, %c0_i32, %c0_i32_0 : i32, i32, i32
  }
  func.func @transform_4(%arg0: i32) -> (i32, i32, i32) {
    %c0_i32 = arith.constant 0 : i32
    %c0_i32_0 = arith.constant 0 : i32
    %c0_i32_1 = arith.constant 0 : i32
    return %arg0, %c0_i32, %c0_i32_0 : i32, i32, i32
  }
}

</mosaic_0001>

<bundles_post_ra>
// kernel: tpu_custom_call.1
= control target key start
LH: loop header
LB: loop body
LE: loop exit
PB: predicated region body
PF: predicated region fallthrough
CT: control target
= control target key end

     0   :  { %10 = vsyncpa [#allocation3], 0  ;;  %s994_s0 = inlined_call_operand.hbm [shape: bf16[2,16,32], index: 0, kind: input, shape index: {}]   ;;  %s995_s1 = inlined_call_operand.hbm [shape: bf16[32,16], index: 1, kind: input, shape index: {}]   ;;  %s996_s2 = inlined_call_operand.hbm [shape: f32[1,16], index: 2, kind: input, shape index: {}]   ;;  %s997_s3 = inlined_call_operand.hbm [shape: f32[2,16,32], index: 3, kind: output, shape index: {0}]   ;;  %s998_s4 = inlined_call_operand.hbm [shape: f32[2,16,16], index: 4, kind: output, shape index: {1}]  }
   0x1   :  { %11 = vsyncpa [#allocation6], 0 }
   0x2   :  { %12 = vsyncpa [#allocation4], 0 }
   0x3   :  { %13 = vsyncpa [#allocation10], 0  ;;  %s836_s15 = smov [#allocation5]   ;;  %s837_s17 = smov [#allocation2]  }
   0x4   :  { %s31_s16 = sshll.u32 %s836_s15, 4  ;;  %s19_s18 = sshll.u32 %s837_s17, 4  ;;  %s32_s16 = int_to_ptr.vmem [resolvable:$true] %s31_s16  ;;  %s875_s18 = int_to_ptr.vmem [resolvable:$true] %s19_s18 }
   0x5   :  { %s718_s21 = scalar_lea.hbm %s995_s1, 256 }
   0x6   :  { %p719_p0 = scmp.ne.s32.totalorder %s995_s1, %s718_s21  ;;  %p722_p1 = scmp.lt.u32.totalorder %s718_s21, %s995_s1 }
   0x8   :  { %p724_p2 = pnand %p722_p1, %p719_p0 }
   0xa   :  { %727 = shalt.err (!%p724_p2)
}
   0xb   :  { %s728_s26 = scalar_lea.vmem %s32_s16, 256  ;;  %p733_p4 = scmp.lt.s32.totalorder %s32_s16, %s32_s16 }
   0xc   :  { %p729_p3 = scmp.ne.s32.totalorder %s32_s16, %s728_s26  ;;  %p734_p5 = scmp.lt.s32.totalorder %s728_s26, %s728_s26 }
   0xe   :  { %p735_p6 = por %p734_p5, %p733_p4 }
  0x10   :  { %p736_p7 = pnand %p735_p6, %p729_p3 }
  0x12   :  { %739 = shalt.err (!%p736_p7)
}
  0x13   :  { %s838_s27 = smov 64   ;;  %s839_s28 = smov 4  }
  0x14   :  { %37 = dma.hbm_to_vmem [thread:$0]  %s995_s1, 256, %s32_s16, [#allocation6], %s838_s27, %s838_s27, %s839_s28  }
  0x15   :  { %s740_s7 = scalar_lea.hbm %s994_s0, 256 }
  0x16   :  { %p741_p8 = scmp.ne.s32.totalorder %s994_s0, %s740_s7  ;;  %p744_p9 = scmp.lt.u32.totalorder %s740_s7, %s994_s0 }
  0x18   :  { %p746_p10 = pnand %p744_p9, %p741_p8 }
  0x1a   :  { %749 = shalt.err (!%p746_p10)
}
  0x1b   :  { %s750_s12 = scalar_lea.vmem %s875_s18, 256  ;;  %p755_p12 = scmp.lt.s32.totalorder %s875_s18, %s875_s18 }
  0x1c   :  { %p751_p11 = scmp.ne.s32.totalorder %s875_s18, %s750_s12  ;;  %p756_p13 = scmp.lt.s32.totalorder %s750_s12, %s750_s12 }
  0x1e   :  { %p757_p0 = por %p756_p13, %p755_p12 }
  0x20   :  { %p758_p1 = pnand %p757_p0, %p751_p11 }
  0x22   :  { %761 = shalt.err (!%p758_p1)
}
  0x23   :  { %25 = dma.hbm_to_vmem [thread:$0]  %s994_s0, 256, %s875_s18, [#allocation3], %s838_s27, %s838_s27, %s839_s28  }
  0x24   :  { %s840_s14 = smov [#allocation7]   ;;  %s762_s19 = scalar_lea.hbm %s996_s2, 16 }
  0x25   :  { %s44_s15 = sshll.u32 %s840_s14, 4  ;;  %p763_p2 = scmp.ne.s32.totalorder %s996_s2, %s762_s19  ;;  %s45_s15 = int_to_ptr.vmem [resolvable:$true] %s44_s15 }
  0x26   :  { %p766_p3 = scmp.lt.u32.totalorder %s762_s19, %s996_s2 }
  0x28   :  { %p768_p4 = pnand %p766_p3, %p763_p2 }
  0x2a   :  { %771 = shalt.err (!%p768_p4)
}
  0x2b   :  { %s772_s24 = scalar_lea.vmem %s45_s15, 16  ;;  %s776_s0 = scalar_lea.vmem %s45_s15, 32 }
  0x2c   :  { %p773_p5 = scmp.ne.s32.totalorder %s45_s15, %s772_s24  ;;  %p777_p6 = scmp.lt.s32.totalorder %s45_s15, %s45_s15 }
  0x2d   :  { %p778_p7 = scmp.lt.s32.totalorder %s776_s0, %s772_s24 }
  0x2f   :  { %p779_p8 = por %p778_p7, %p777_p6 }
  0x31   :  { %p780_p9 = pnand %p779_p8, %p773_p5 }
  0x33   :  { %783 = shalt.err (!%p780_p9)
}
  0x34   :  { %47 = dma.hbm_to_vmem [thread:$0]  %s996_s2, 16, %s45_s15, [#allocation6]  }
  0x35   :  { %828 = dma.done.wait [#allocation3], 256  }
  0x36   :  { %829 = vsyncadd [#allocation3], 4294967040 }
  0x37   :  { %830 = dma.done.wait [#allocation6], 272  }
  0x38   :  { %831 = vsyncadd [#allocation6], 4294967024  ;;  %v682_v0 = vld [vmem:[#allocation5] sm:$0xff]   ;;  %v683_v1 = vld [vmem:[#allocation5 + $0x8] sm:$0xff]   ;;  %vm95_vm0 = vcmask 261120   ;;  %v841_v4 = vmov 0.0  }
  0x39   :  { %624 = vmatprep.subr.bf16.mxu0 %v682_v0  ;;  %v684_v2 = vld [vmem:[#allocation2] sm:$0xff]   ;;  %v685_v3 = vld [vmem:[#allocation2 + $0x8] sm:$0xff]   ;;  %632 = vmatprep.subr.bf16.mxu1 %v841_v4  ;;  %vm842_vm1 = vmmov 0   ;;  %s843_s2 = smov 116   ;;  %s844_s26 = smov 120   ;;  %vm156_vm2 = vcmask 31744  }
  0x3a   :  { %625 = vmatpush3.bf16.msra.mxu0 %v682_v0  ;;  %628 = vmatprep.mubr.msk.bf16.mxu0 %vm95_vm0, %v684_v2  ;;  %v595_v6 = vld [vmem:[#allocation7] ss:$0 sm:$0xff]  ;;  %s845_s27 = smov 124   ;;  %vm254_vm3 = vcmask 130048   ;;  %s846_s28 = smov [#allocation9]  }
  0x3b   :  { %626 = vmatprep.subr.bf16.mxu0 %v683_v1  ;;  %634 = vmatprep.mubr.msk.bf16.mxu1 %vm842_vm1, %v841_v4  ;;  %s578_s29 = sshll.u32 %s846_s28, 4  ;;  %s579_s29 = int_to_ptr.vmem [resolvable:$true] %s578_s29 }
  0x3c   :  { %s784_s30 = scalar_lea.vmem %s579_s29, 512  ;;  %p789_p11 = scmp.lt.s32.totalorder %s579_s29, %s579_s29 }
  0x3d   :  { %p785_p10 = scmp.ne.s32.totalorder %s579_s29, %s784_s30  ;;  %p790_p12 = scmp.lt.s32.totalorder %s784_s30, %s784_s30 }
  0x3e   :  { %627 = vmatpush3.bf16.msra.mxu0 %v683_v1 }
  0x3f   :  { %638 = vmatprep.subr.bf16.mxu0 %v841_v4  ;;  %p791_p13 = por %p790_p12, %p789_p11 }
  0x41   :  { %629 = vmatmul.mubr.msk.bf16.vlgmr.msra.gmra.mrb[0].mxu0 %vm95_vm0, %v685_v3  ;;  %p792_p0 = pnand %p791_p13, %p785_p10 }
  0x42   :  { %640 = vmatprep.mubr.msk.bf16.mxu0 %vm842_vm1, %v841_v4 }
 0x114   :  { %v630_v5 = vpop.f32.mrb[0].mxu0 }
 0x115   :  { %v136_v7 = vpop.f32.mrb[1].mxu0  ;;  %v145_v9 = vadd.f32 %v630_v5, %v595_v6 }
 0x116   :  { %v631_v8 = vpop.f32.mrb[2].mxu0  ;;  %v137_v12 = vadd.f32 %v595_v6, %v136_v7 }
 0x117   :  { %v148_v10 = vadd.f32 %v631_v8, %v595_v6  ;;  %v139_v11 = vpop.f32.mrb[3].mxu0 }
 0x118   :  { %v140_v13 = vadd.f32 %v595_v6, %v139_v11 }
 0x119   :  { %v152_v14 = vpack.c.bf16 %v148_v10, %v145_v9 }
 0x11a   :  { %v151_v15 = vpack.c.bf16 %v140_v13, %v137_v12 }
 0x11c   :  { %309 = vrot.lane.b32.xlu1 %v151_v15, %s843_s2  ;;  %154 = vrot.lane.b32.xlu0 %v151_v15, %s844_s26 }
 0x120   :  { %360 = vrot.lane.b32.xlu1 %v152_v14, %s843_s2  ;;  %205 = vrot.lane.b32.xlu0 %v152_v14, %s844_s26 }
 0x124   :  { %358 = vrot.lane.b32.xlu1 %v152_v14, %s845_s27  ;;  %307 = vrot.lane.b32.xlu0 %v151_v15, %s845_s27 }
 0x18e   :  { %v155_v16 = vpop.permute.xlu0 %154  ;;  %v310_v18 = vpop.permute.xlu1 %309 }
 0x18f   :  { %v161_v17 = vsel %vm156_vm2, %v155_v16, 0  ;;  %v315_v21 = vsel %vm156_vm2, %v310_v18, 0 }
 0x190   :  { %633 = vmatpush3.bf16.xpose.msra.mxu1 %v161_v17 }
 0x191   :  { %644 = vmatprep.subr.bf16.mxu1 %v841_v4 }
 0x192   :  { %v206_v19 = vpop.permute.xlu0 %205  ;;  %v361_v22 = vpop.permute.xlu1 %360 }
 0x193   :  { %v211_v20 = vsel %vm156_vm2, %v206_v19, 0  ;;  %v366_v23 = vsel %vm156_vm2, %v361_v22, 0 }
 0x194   :  { %639 = vmatpush3.bf16.xpose.msra.mxu0 %v211_v20 }
 0x195   :  { %650 = vmatprep.subr.bf16.mxu0 %v841_v4 }
 0x196   :  { %v308_v24 = vpop.permute.xlu0 %307  ;;  %v359_v25 = vpop.permute.xlu1 %358 }
 0x197   :  { %635 = vmatmul.mubr.msk.bf16.vlgmr.msra.gmra.mrb[0].mxu1 %vm156_vm2, %v151_v15 }
 0x198   :  { %645 = vmatpush3.bf16.xpose.msra.mxu1 %v315_v21  ;;  %646 = vmatprep.mubr.msk.bf16.mxu1 %vm842_vm1, %v841_v4 }
 0x199   :  { %656 = vmatprep.subr.bf16.mxu1 %v841_v4 }
 0x19b   :  { %641 = vmatmul.mubr.msk.bf16.vlgmr.msra.gmra.mrb[4].mxu0 %vm156_vm2, %v152_v14 }
 0x19c   :  { %651 = vmatpush3.bf16.xpose.msra.mxu0 %v366_v23  ;;  %652 = vmatprep.mubr.msk.bf16.mxu0 %vm842_vm1, %v841_v4 }
 0x19d   :  { %662 = vmatprep.subr.bf16.mxu0 %v841_v4 }
 0x19f   :  { %647 = vmatmul.mubr.msk.bf16.vlgmr.msra.gmra.mrb[4].mxu1 %vm156_vm2, %v308_v24 }
 0x1a0   :  { %657 = vmatpush3.bf16.msra.mxu1 %v684_v2  ;;  %658 = vmatprep.mubr.msk.bf16.mxu1 %vm842_vm1, %v841_v4 }
 0x1a3   :  { %653 = vmatmul.mubr.msk.bf16.vlgmr.msra.gmra.mrb[8].mxu0 %vm156_vm2, %v359_v25 }
 0x1a4   :  { %663 = vmatpush3.bf16.msra.mxu0 %v685_v3  ;;  %664 = vmatprep.mubr.msk.bf16.mxu0 %vm842_vm1, %v841_v4 }
 0x26a   :  { %v197_v26 = vpop.f32.mrb[0].mxu1 }
 0x26b   :  { %v636_v27 = vpop.f32.mrb[1].mxu1  ;;  %v255_v38 = vsel %vm254_vm3, %v197_v26, -inf }
 0x26c   :  { %v200_v28 = vpop.f32.mrb[2].mxu1 }
 0x26d   :  { %v637_v29 = vpop.f32.mrb[3].mxu1  ;;  %v258_v30 = vsel %vm254_vm3, %v200_v28, -inf }
 0x26e   :  { %259 = vmax.xlane.f32.xlu1 %v258_v30  ;;  %v247_v31 = vpop.f32.mrb[4].mxu0 }
 0x26f   :  { %v642_v32 = vpop.f32.mrb[5].mxu0  ;;  %v261_v33 = vsel %vm254_vm3, %v247_v31, -inf }
 0x270   :  { %262 = vmax.xlane.f32.xlu0 %v261_v33  ;;  %v250_v34 = vpop.f32.mrb[6].mxu0 }
 0x271   :  { %v643_v35 = vpop.f32.mrb[7].mxu0  ;;  %v264_v44 = vsel %vm254_vm3, %v250_v34, -inf }
 0x272   :  { %v351_v36 = vpop.f32.mrb[4].mxu1 }
 0x273   :  { %v648_v37 = vpop.f32.mrb[5].mxu1  ;;  %v409_v39 = vsel %vm254_vm3, %v351_v36, -inf }
 0x274   :  { %256 = vmax.xlane.f32.xlu0 %v255_v38  ;;  %410 = vmax.xlane.f32.xlu1 %v409_v39  ;;  %v354_v40 = vpop.f32.mrb[6].mxu1 }
 0x275   :  { %v649_v41 = vpop.f32.mrb[7].mxu1  ;;  %v412_v48 = vsel %vm254_vm3, %v354_v40, -inf }
 0x276   :  { %v402_v42 = vpop.f32.mrb[8].mxu0 }
 0x277   :  { %v654_v43 = vpop.f32.mrb[9].mxu0  ;;  %v415_v45 = vsel %vm254_vm3, %v402_v42, -inf }
 0x278   :  { %265 = vmax.xlane.f32.xlu0 %v264_v44  ;;  %v405_v46 = vpop.f32.mrb[10].mxu0  ;;  %416 = vmax.xlane.f32.xlu1 %v415_v45 }
 0x279   :  { %v655_v47 = vpop.f32.mrb[11].mxu0  ;;  %v418_v49 = vsel %vm254_vm3, %v405_v46, -inf }
 0x27c   :  { %413 = vmax.xlane.f32.xlu0 %v412_v48 }
 0x280   :  { %419 = vmax.xlane.f32.xlu0 %v418_v49 }
 0x2fb   :  { %v260_v50 = vpop.xlane.xlu1 %259 }
 0x2fc   :  { %v268_v58 = vsub.f32 %v200_v28, %v260_v50 }
 0x2fd   :  { %v263_v51 = vpop.xlane.xlu0 %262 }
 0x2fe   :  { %v269_v52 = vsub.f32 %v247_v31, %v263_v51  ;;  %v273_v1 = vmul.f32 1.442695, %v268_v58 }
 0x300   :  { %v275_v53 = vmul.f32 1.442695, %v269_v52 }
 0x301   :  { %v411_v54 = vpop.xlane.xlu1 %410  ;;  %v257_v55 = vpop.xlane.xlu0 %256 }
 0x302   :  { %686 = vpow2.f32 %v275_v53  ;;  %v421_v56 = vsub.f32 %v351_v36, %v411_v54  ;;  %v267_v57 = vsub.f32 %v197_v26, %v257_v55 }
 0x304   :  { %v271_v59 = vmul.f32 1.442695, %v267_v57  ;;  %v425_v60 = vmul.f32 1.442695, %v421_v56 }
 0x305   :  { %v417_v61 = vpop.xlane.xlu1 %416  ;;  %v266_v62 = vpop.xlane.xlu0 %265 }
 0x306   :  { %v423_v63 = vsub.f32 %v402_v42, %v417_v61  ;;  %v270_v0 = vsub.f32 %v250_v34, %v266_v62  ;;  %688 = vpow2.f32 %v271_v59 }
 0x307   :  { %690 = vpow2.f32 %v425_v60 }
 0x308   :  { %v277_v2 = vmul.f32 1.442695, %v270_v0  ;;  %v429_v3 = vmul.f32 1.442695, %v423_v63 }
 0x309   :  { %v414_v4 = vpop.xlane.xlu0 %413 }
 0x30a   :  { %v422_v5 = vsub.f32 %v354_v40, %v414_v4  ;;  %692 = vpow2.f32 %v277_v2 }
 0x30b   :  { %694 = vpow2.f32 %v273_v1 }
 0x30c   :  { %v942_v6 = vpop.eup %686  ;;  %696 = vpow2.f32 %v429_v3  ;;  %v427_v7 = vmul.f32 1.442695, %v422_v5 }
 0x30d   :  { %v420_v8 = vpop.xlane.xlu0 %419  ;;  %v285_v9 = vsel %vm254_vm3, %v942_v6, 0.0 }
 0x30e   :  { %v424_v10 = vsub.f32 %v405_v46, %v420_v8  ;;  %286 = vadd.xlane.f32.xlu1 %v285_v9  ;;  %698 = vpow2.f32 %v427_v7 }
 0x310   :  { %v689_v11 = vpop.eup %688  ;;  %v431_v12 = vmul.f32 1.442695, %v424_v10 }
 0x311   :  { %v279_v13 = vsel %vm254_vm3, %v689_v11, 0.0  ;;  %v691_v14 = vpop.eup %690 }
 0x312   :  { %280 = vadd.xlane.f32.xlu1 %v279_v13  ;;  %700 = vpow2.f32 %v431_v12  ;;  %v433_v17 = vsel %vm254_vm3, %v691_v14, 0.0 }
 0x314   :  { %v693_v15 = vpop.eup %692 }
 0x315   :  { %v695_v16 = vpop.eup %694  ;;  %v288_v18 = vsel %vm254_vm3, %v693_v15, 0.0 }
 0x316   :  { %v697_v19 = vpop.eup %696  ;;  %434 = vadd.xlane.f32.xlu1 %v433_v17  ;;  %289 = vadd.xlane.f32.xlu0 %v288_v18  ;;  %v282_v21 = vsel %vm254_vm3, %v695_v16, 0.0 }
 0x317   :  { %v439_v20 = vsel %vm254_vm3, %v697_v19, 0.0 }
 0x318   :  { %v699_v22 = vpop.eup %698 }
 0x319   :  { %v436_v23 = vsel %vm254_vm3, %v699_v22, 0.0 }
 0x31a   :  { %440 = vadd.xlane.f32.xlu1 %v439_v20  ;;  %283 = vadd.xlane.f32.xlu0 %v282_v21 }
 0x31c   :  { %v701_v24 = vpop.eup %700 }
 0x31d   :  { %v442_v25 = vsel %vm254_vm3, %v701_v24, 0.0 }
 0x31e   :  { %437 = vadd.xlane.f32.xlu0 %v436_v23 }
 0x322   :  { %443 = vadd.xlane.f32.xlu0 %v442_v25 }
 0x39b   :  { %v287_v26 = vpop.xlane.xlu1 %286 }
 0x39c   :  { %v293_v31 = vmul.f32 2.0, %v287_v26 }
 0x39f   :  { %v281_v27 = vpop.xlane.xlu1 %280 }
 0x3a0   :  { %v291_v28 = vmul.f32 2.0, %v281_v27 }
 0x3a2   :  { %702 = vrcp.f32 %v291_v28 }
 0x3a3   :  { %v435_v29 = vpop.xlane.xlu1 %434  ;;  %v290_v30 = vpop.xlane.xlu0 %289 }
 0x3a4   :  { %v445_v32 = vmul.f32 2.0, %v435_v29  ;;  %v294_v38 = vmul.f32 2.0, %v290_v30 }
 0x3a6   :  { %704 = vrcp.f32 %v445_v32 }
 0x3a7   :  { %v441_v33 = vpop.xlane.xlu1 %440  ;;  %v284_v34 = vpop.xlane.xlu0 %283  ;;  %706 = vrcp.f32 %v293_v31 }
 0x3a8   :  { %v447_v35 = vmul.f32 2.0, %v441_v33  ;;  %v292_v36 = vmul.f32 2.0, %v284_v34 }
 0x3aa   :  { %708 = vrcp.f32 %v447_v35 }
 0x3ab   :  { %v438_v37 = vpop.xlane.xlu0 %437  ;;  %710 = vrcp.f32 %v292_v36 }
 0x3ac   :  { %v446_v39 = vmul.f32 2.0, %v438_v37  ;;  %v703_v40 = vpop.eup %702 }
 0x3ad   :  { %v299_v44 = vmul.f32 %v703_v40, %v689_v11 }
 0x3ae   :  { %712 = vrcp.f32 %v446_v39 }
 0x3af   :  { %v444_v41 = vpop.xlane.xlu0 %443  ;;  %714 = vrcp.f32 %v294_v38 }
 0x3b0   :  { %v705_v42 = vpop.eup %704  ;;  %v448_v43 = vmul.f32 2.0, %v444_v41 }
 0x3b1   :  { %v453_v45 = vmul.f32 %v705_v42, %v691_v14  ;;  %v707_v46 = vpop.eup %706 }
 0x3b2   :  { %716 = vrcp.f32 %v448_v43  ;;  %v301_v49 = vmul.f32 %v707_v46, %v942_v6 }
 0x3b3   :  { %v457_v47 = vadd.f32 %v453_v45, %v299_v44 }
 0x3b4   :  { %v709_v48 = vpop.eup %708 }
 0x3b5   :  { %v455_v50 = vmul.f32 %v709_v48, %v697_v19  ;;  %461 = vst.msk [vmem:[#allocation9] sm:$0xff] %vm254_vm3, %v457_v47  ;;  %v711_v51 = vpop.eup %710 }
 0x3b6   :  { %v300_v54 = vmul.f32 %v711_v51, %v695_v16 }
 0x3b7   :  { %v459_v52 = vadd.f32 %v455_v50, %v301_v49 }
 0x3b8   :  { %v713_v53 = vpop.eup %712 }
 0x3b9   :  { %463 = vst.msk [vmem:[#allocation9 + $0x10] sm:$0xff] %vm254_vm3, %v459_v52  ;;  %v454_v55 = vmul.f32 %v713_v53, %v699_v22  ;;  %v715_v56 = vpop.eup %714 }
 0x3ba   :  { %v302_v59 = vmul.f32 %v715_v56, %v693_v15 }
 0x3bb   :  { %v458_v57 = vadd.f32 %v454_v55, %v300_v54 }
 0x3bc   :  { %v717_v58 = vpop.eup %716 }
 0x3bd   :  { %v456_v60 = vmul.f32 %v717_v58, %v701_v24  ;;  %v465_v61 = vpack.c.bf16 %v458_v57, %v457_v47  ;;  %462 = vst.msk [vmem:[#allocation9 + $0x8] sm:$0xff] %vm254_vm3, %v458_v57 }
 0x3bf   :  { %v460_v62 = vadd.f32 %v456_v60, %v302_v59  ;;  %659 = vmatmul.mubr.msk.bf16.vlgmr.msra.gmra.mrb[8].mxu1 %vm254_vm3, %v465_v61 }
 0x3c1   :  { %464 = vst.msk [vmem:[#allocation9 + $0x18] sm:$0xff] %vm254_vm3, %v460_v62  ;;  %v466_v63 = vpack.c.bf16 %v460_v62, %v459_v52 }
 0x3c3   :  { %665 = vmatmul.mubr.msk.bf16.vlgmr.msra.gmra.mrb[12].mxu0 %vm254_vm3, %v466_v63 }
 0x3c4   :  { %795 = shalt.err (!%p792_p0)
}
 0x3c5   :  { %s796_s7 = scalar_lea.hbm %s998_s4, 512 }
 0x3c6   :  { %p797_p1 = scmp.ne.s32.totalorder %s998_s4, %s796_s7  ;;  %p800_p2 = scmp.lt.u32.totalorder %s796_s7, %s998_s4 }
 0x3c8   :  { %p802_p3 = pnand %p800_p2, %p797_p1 }
 0x3ca   :  { %805 = shalt.err (!%p802_p3)
}
 0x3cb   :  { %s847_s12 = smov 128   ;;  %s848_s1 = smov 8  }
 0x3cc   :  { %584 = dma.vmem_to_hbm [thread:$0]  %s579_s29, 512, %s998_s4, [#allocation10], %s847_s12, %s847_s12, %s848_s1  }
 0x3cd   :  { %s849_s15 = smov [#allocation8]  }
 0x3ce   :  { %s566_s16 = sshll.u32 %s849_s15, 4  ;;  %s567_s16 = int_to_ptr.vmem [resolvable:$true] %s566_s16 }
 0x3cf   :  { %s806_s4 = scalar_lea.vmem %s567_s16, 512  ;;  %p811_p5 = scmp.lt.s32.totalorder %s567_s16, %s567_s16 }
 0x3d0   :  { %p807_p4 = scmp.ne.s32.totalorder %s567_s16, %s806_s4  ;;  %p812_p6 = scmp.lt.s32.totalorder %s806_s4, %s806_s4 }
 0x3d2   :  { %p813_p7 = por %p812_p6, %p811_p5 }
 0x3d4   :  { %p814_p8 = pnand %p813_p7, %p807_p4 }
 0x492   :  { %v505_v0 = vpop.f32.mrb[8].mxu1 }
 0x493   :  { %557 = vst.msk [vmem:[#allocation8] sm:$0xff] %vm95_vm0, %v505_v0  ;;  %v660_v1 = vpop.f32.mrb[9].mxu1 }
 0x494   :  { %v508_v2 = vpop.f32.mrb[10].mxu1 }
 0x495   :  { %558 = vst.msk [vmem:[#allocation8 + $0x8] sm:$0xff] %vm95_vm0, %v508_v2  ;;  %v661_v3 = vpop.f32.mrb[11].mxu1 }
 0x496   :  { %v550_v4 = vpop.f32.mrb[12].mxu0 }
 0x497   :  { %559 = vst.msk [vmem:[#allocation8 + $0x10] sm:$0xff] %vm95_vm0, %v550_v4  ;;  %v666_v5 = vpop.f32.mrb[13].mxu0 }
 0x498   :  { %v553_v6 = vpop.f32.mrb[14].mxu0 }
 0x499   :  { %560 = vst.msk [vmem:[#allocation8 + $0x18] sm:$0xff] %vm95_vm0, %v553_v6  ;;  %v667_v7 = vpop.f32.mrb[15].mxu0 }
 0x49a   :  { %817 = shalt.err (!%p814_p8)
}
 0x49b   :  { %s818_s20 = scalar_lea.hbm %s997_s3, 512 }
 0x49c   :  { %p819_p9 = scmp.ne.s32.totalorder %s997_s3, %s818_s20  ;;  %p822_p10 = scmp.lt.u32.totalorder %s818_s20, %s997_s3 }
 0x49e   :  { %p824_p11 = pnand %p822_p10, %p819_p9 }
 0x4a0   :  { %827 = shalt.err (!%p824_p11)
}
 0x4a1   :  { %572 = dma.vmem_to_hbm [thread:$0]  %s567_s16, 512, %s997_s3, [#allocation4], %s847_s12, %s847_s12, %s848_s1  }
 0x4a2   :  { %832 = dma.done.wait [#allocation4], 512  }
 0x4a3   :  { %833 = vsyncadd [#allocation4], 4294966784 }
 0x4a4   :  { %834 = dma.done.wait [#allocation10], 512  }
 0x4a5   :  { %835 = vsyncadd [#allocation10], 4294966784 }
 0x4a6   :  { %591 = vsyncpa [#allocation3], 1 }
 0x4a7   :  { %592 = vsyncpa [#allocation6], 1 }
 0x4a8   :  { %593 = vsyncpa [#allocation4], 1 }
 0x4a9   :  { %594 = vsyncpa [#allocation10], 1 }

</bundles_post_ra>
